<compile_context>
chip_gen: v6e
topology: v6e:2x2x1
jax: 0.10.0
libtpu: 0.0.40
codegen_flags: <defaults>
</compile_context>

<pallas_src>
import functools

import jax
import jax.numpy as jnp
from jax.experimental import pallas as pl
from jax.experimental.pallas import tpu as pltpu  # noqa: F401

LANE = 128
SUBLANE = 8


def _round_up(n, m):
    return ((n + m - 1) // m) * m


def _pad_to(x, rows, cols):
    r, c = x.shape
    if r == rows and c == cols:
        return x
    return jnp.pad(x, ((0, rows - r), (0, cols - c)))


def _best_order(nd, ns, fi, fo):
    """Pick the cheaper association for A(nd,ns) @ X(ns,fi) @ W(fi,fo)."""
    cost_xw_first = ns * fi * fo + nd * ns * fo   # A @ (X @ W)
    cost_ax_first = nd * ns * fi + nd * fi * fo   # (A @ X) @ W
    return "xw_first" if cost_xw_first <= cost_ax_first else "ax_first"


def _gripnet_fused_kernel(a_pp_ref, a_inter_ref, a_mcip_ref, x_ref,
                          w0_ref, w1_ref, wext_ref, wout_ref, o_ref,
                          *, orders):
    """Fused 4-layer GripNet forward; all tensors resident in VMEM."""
    compute_dt = a_pp_ref.dtype  # bf16 MXU inputs

    def layer(a, x, w, order, relu):
        # Two MXU matmuls with f32 accumulation; association chosen at trace
        # time from shapes.
        if order == "xw_first":
            t = jnp.dot(x, w, preferred_element_type=jnp.float32)
            h = jnp.dot(a, t.astype(compute_dt),
                        preferred_element_type=jnp.float32)
        else:
            t = jnp.dot(a, x, preferred_element_type=jnp.float32)
            h = jnp.dot(t.astype(compute_dt), w,
                        preferred_element_type=jnp.float32)
        if relu:
            h = jnp.maximum(h, 0.0)
        return h

    a_pp = a_pp_ref[...]  # loaded once, reused by both pp layers

    # pp super-vertex: two internal GCN layers.
    h = layer(a_pp, x_ref[...], w0_ref[...], orders[0], relu=True)
    h = layer(a_pp, h.astype(compute_dt), w1_ref[...], orders[1], relu=True)
    # mcip super-vertex: external inter-graph layer, then one internal layer.
    z = layer(a_inter_ref[...], h.astype(compute_dt), wext_ref[...],
              orders[2], relu=True)
    z = layer(a_mcip_ref[...], z.astype(compute_dt), wout_ref[...],
              orders[3], relu=False)

    o_ref[...] = z.astype(o_ref.dtype)


def gripnet_forward(x_pp, a_pp, a_inter, a_mcip, params):
    """relu-chained GCN stack as one fused pallas_call; returns (n_mcip, f_out) f32."""
    n_pp, f_in = x_pp.shape
    n_mcip = a_mcip.shape[0]
    f_h0 = params["pp_w0"].shape[1]
    f_h1 = params["pp_w1"].shape[1]
    f_ex = params["mcip_w_ext"].shape[1]
    f_out = params["mcip_w0"].shape[1]

    # Lane-dense padding: features -> multiple of 128, node rows -> multiple of 8.
    np_p = _round_up(n_pp, SUBLANE)
    nm_p = _round_up(n_mcip, SUBLANE)
    fi_p = _round_up(f_in, LANE)
    fh0_p = _round_up(f_h0, LANE)
    fh1_p = _round_up(f_h1, LANE)
    fe_p = _round_up(f_ex, LANE)
    fo_p = _round_up(f_out, LANE)

    cdt = jnp.bfloat16  # MXU input dtype; accumulation stays f32 in-kernel.
    a_pp_p = _pad_to(a_pp, np_p, np_p).astype(cdt)
    a_int_p = _pad_to(a_inter, nm_p, np_p).astype(cdt)
    a_mc_p = _pad_to(a_mcip, nm_p, nm_p).astype(cdt)
    x_p = _pad_to(x_pp, np_p, fi_p).astype(cdt)
    w0_p = _pad_to(params["pp_w0"], fi_p, fh0_p).astype(cdt)
    w1_p = _pad_to(params["pp_w1"], fh0_p, fh1_p).astype(cdt)
    we_p = _pad_to(params["mcip_w_ext"], fh1_p, fe_p).astype(cdt)
    wo_p = _pad_to(params["mcip_w0"], fe_p, fo_p).astype(cdt)

    orders = (
        _best_order(np_p, np_p, fi_p, fh0_p),
        _best_order(np_p, np_p, fh0_p, fh1_p),
        _best_order(nm_p, np_p, fh1_p, fe_p),
        _best_order(nm_p, nm_p, fe_p, fo_p),
    )

    kernel = functools.partial(_gripnet_fused_kernel, orders=orders)

    def full_spec(shape):
        return pl.BlockSpec(shape, lambda i: (0,) * len(shape))

    out_p = pl.pallas_call(
        kernel,
        out_shape=jax.ShapeDtypeStruct((nm_p, fo_p), jnp.float32),
        grid=(1,),
        in_specs=[
            full_spec(a_pp_p.shape), full_spec(a_int_p.shape),
            full_spec(a_mc_p.shape), full_spec(x_p.shape),
            full_spec(w0_p.shape), full_spec(w1_p.shape),
            full_spec(we_p.shape), full_spec(wo_p.shape),
        ],
        out_specs=full_spec((nm_p, fo_p)),
    )(a_pp_p, a_int_p, a_mc_p, x_p, w0_p, w1_p, we_p, wo_p)

    return out_p[:n_mcip, :f_out]


class Model:
    """GripNet(freebase-a): pp super-vertex -> mcip super-vertex (fused)."""

    def __init__(self, params):
        self.params = params
        self._fwd = jax.jit(gripnet_forward)

    def __call__(self, x_pp, a_pp, a_inter, a_mcip):
        return self._fwd(x_pp, a_pp, a_inter, a_mcip, self.params)


def _norm_adj(key, n_dst, n_src):
    """Deterministic random sparse-ish adjacency, row-normalized (dense)."""
    a = (jax.random.uniform(key, (n_dst, n_src)) < 0.3).astype(jnp.float32)
    if n_dst == n_src:
        a = jnp.maximum(a, jnp.eye(n_dst, dtype=jnp.float32))  # self-loops
    deg = jnp.maximum(a.sum(axis=1, keepdims=True), 1.0)
    return a / deg


if __name__ == "__main__":
    key = jax.random.PRNGKey(0)
    ks = jax.random.split(key, 8)

    # Small synthetic supergraph.
    n_pp, n_mcip = 32, 48          # nodes in pp / mcip super-vertices
    f_in, f_hid, f_out = 16, 32, 32

    x_pp = jax.random.normal(ks[0], (n_pp, f_in), dtype=jnp.float32)
    a_pp = _norm_adj(ks[1], n_pp, n_pp)        # pp internal graph
    a_inter = _norm_adj(ks[2], n_mcip, n_pp)   # pp -> mcip inter-graph edges
    a_mcip = _norm_adj(ks[3], n_mcip, n_mcip)  # mcip internal graph

    params = {
        "pp_w0": 0.1 * jax.random.normal(ks[4], (f_in, f_hid), jnp.float32),
        "pp_w1": 0.1 * jax.random.normal(ks[5], (f_hid, f_hid), jnp.float32),
        "mcip_w_ext": 0.1 * jax.random.normal(ks[6], (f_hid, f_hid), jnp.float32),
        "mcip_w0": 0.1 * jax.random.normal(ks[7], (f_hid, f_out), jnp.float32),
    }

    model = Model(params)
    out = model(x_pp, a_pp, a_inter, a_mcip)
    jax.block_until_ready(out)
    assert out.shape == (n_mcip, f_out) and out.dtype == jnp.float32
    assert bool(jnp.all(jnp.isfinite(out)))
    print("KERNEL_OK")
</pallas_src>

<mosaic_0001>
module attributes {stable_mosaic.version = 11 : i64} {
  func.func @_gripnet_fused_kernel(%arg0: i32, %arg1: memref<32x32xbf16, #tpu.memory_space<vmem>>, %arg2: memref<48x32xbf16, #tpu.memory_space<vmem>>, %arg3: memref<48x48xbf16, #tpu.memory_space<vmem>>, %arg4: memref<32x128xbf16, #tpu.memory_space<vmem>>, %arg5: memref<128x128xbf16, #tpu.memory_space<vmem>>, %arg6: memref<128x128xbf16, #tpu.memory_space<vmem>>, %arg7: memref<128x128xbf16, #tpu.memory_space<vmem>>, %arg8: memref<128x128xbf16, #tpu.memory_space<vmem>>, %arg9: memref<48x128xf32, #tpu.memory_space<vmem>>) attributes {dimension_semantics = [#tpu.dimension_semantics<arbitrary>], iteration_bounds = array<i64: 1>, scalar_prefetch = 0 : i64, scratch_operands = 0 : i64, tpu.core_type = #tpu.core_type<tc>, window_params = [{pipeline_mode = #tpu.pipeline_mode<synchronous>, transform_indices = @transform_0, window_bounds = array<i64: 32, 32>}, {pipeline_mode = #tpu.pipeline_mode<synchronous>, transform_indices = @transform_1, window_bounds = array<i64: 48, 32>}, {pipeline_mode = #tpu.pipeline_mode<synchronous>, transform_indices = @transform_2, window_bounds = array<i64: 48, 48>}, {pipeline_mode = #tpu.pipeline_mode<synchronous>, transform_indices = @transform_3, window_bounds = array<i64: 32, 128>}, {pipeline_mode = #tpu.pipeline_mode<synchronous>, transform_indices = @transform_4, window_bounds = array<i64: 128, 128>}, {pipeline_mode = #tpu.pipeline_mode<synchronous>, transform_indices = @transform_5, window_bounds = array<i64: 128, 128>}, {pipeline_mode = #tpu.pipeline_mode<synchronous>, transform_indices = @transform_6, window_bounds = array<i64: 128, 128>}, {pipeline_mode = #tpu.pipeline_mode<synchronous>, transform_indices = @transform_7, window_bounds = array<i64: 128, 128>}, {pipeline_mode = #tpu.pipeline_mode<synchronous>, transform_indices = @transform_8, window_bounds = array<i64: 48, 128>}]} {
    %c0 = arith.constant 0 : index
    %c0_0 = arith.constant 0 : index
    %0 = vector.load %arg1[%c0, %c0_0] : memref<32x32xbf16, #tpu.memory_space<vmem>>, vector<32x32xbf16>
    %c0_1 = arith.constant 0 : index
    %c0_2 = arith.constant 0 : index
    %1 = vector.load %arg4[%c0_1, %c0_2] : memref<32x128xbf16, #tpu.memory_space<vmem>>, vector<32x128xbf16>
    %c0_3 = arith.constant 0 : index
    %c0_4 = arith.constant 0 : index
    %2 = vector.load %arg5[%c0_3, %c0_4] : memref<128x128xbf16, #tpu.memory_space<vmem>>, vector<128x128xbf16>
    %cst = arith.constant dense<0.000000e+00> : vector<32x128xf32>
    %3 = tpu.matmul %1, %2, %cst {dimension_numbers = #tpu.dot_dimension_numbers<[1], [0], [0], [1], [0, 0, 1, 1], [], []>} : vector<32x128xbf16>, vector<128x128xbf16>, vector<32x128xf32> -> vector<32x128xf32>
    %4 = arith.truncf %3 : vector<32x128xf32> to vector<32x128xbf16>
    %cst_5 = arith.constant dense<0.000000e+00> : vector<32x128xf32>
    %5 = tpu.matmul %0, %4, %cst_5 {dimension_numbers = #tpu.dot_dimension_numbers<[1], [0], [0], [1], [0, 0, 1, 1], [], []>} : vector<32x32xbf16>, vector<32x128xbf16>, vector<32x128xf32> -> vector<32x128xf32>
    %cst_6 = arith.constant 0.000000e+00 : f32
    %6 = vector.broadcast %cst_6 : f32 to vector<32x128xf32>
    %7 = arith.maximumf %5, %6 : vector<32x128xf32>
    %8 = arith.truncf %7 : vector<32x128xf32> to vector<32x128xbf16>
    %c0_7 = arith.constant 0 : index
    %c0_8 = arith.constant 0 : index
    %9 = vector.load %arg6[%c0_7, %c0_8] : memref<128x128xbf16, #tpu.memory_space<vmem>>, vector<128x128xbf16>
    %cst_9 = arith.constant dense<0.000000e+00> : vector<32x128xf32>
    %10 = tpu.matmul %8, %9, %cst_9 {dimension_numbers = #tpu.dot_dimension_numbers<[1], [0], [0], [1], [0, 0, 1, 1], [], []>} : vector<32x128xbf16>, vector<128x128xbf16>, vector<32x128xf32> -> vector<32x128xf32>
    %11 = arith.truncf %10 : vector<32x128xf32> to vector<32x128xbf16>
    %cst_10 = arith.constant dense<0.000000e+00> : vector<32x128xf32>
    %12 = tpu.matmul %0, %11, %cst_10 {dimension_numbers = #tpu.dot_dimension_numbers<[1], [0], [0], [1], [0, 0, 1, 1], [], []>} : vector<32x32xbf16>, vector<32x128xbf16>, vector<32x128xf32> -> vector<32x128xf32>
    %cst_11 = arith.constant 0.000000e+00 : f32
    %13 = vector.broadcast %cst_11 : f32 to vector<32x128xf32>
    %14 = arith.maximumf %12, %13 : vector<32x128xf32>
    %c0_12 = arith.constant 0 : index
    %c0_13 = arith.constant 0 : index
    %15 = vector.load %arg2[%c0_12, %c0_13] : memref<48x32xbf16, #tpu.memory_space<vmem>>, vector<48x32xbf16>
    %16 = arith.truncf %14 : vector<32x128xf32> to vector<32x128xbf16>
    %c0_14 = arith.constant 0 : index
    %c0_15 = arith.constant 0 : index
    %17 = vector.load %arg7[%c0_14, %c0_15] : memref<128x128xbf16, #tpu.memory_space<vmem>>, vector<128x128xbf16>
    %cst_16 = arith.constant dense<0.000000e+00> : vector<32x128xf32>
    %18 = tpu.matmul %16, %17, %cst_16 {dimension_numbers = #tpu.dot_dimension_numbers<[1], [0], [0], [1], [0, 0, 1, 1], [], []>} : vector<32x128xbf16>, vector<128x128xbf16>, vector<32x128xf32> -> vector<32x128xf32>
    %19 = arith.truncf %18 : vector<32x128xf32> to vector<32x128xbf16>
    %cst_17 = arith.constant dense<0.000000e+00> : vector<48x128xf32>
    %20 = tpu.matmul %15, %19, %cst_17 {dimension_numbers = #tpu.dot_dimension_numbers<[1], [0], [0], [1], [0, 0, 1, 1], [], []>} : vector<48x32xbf16>, vector<32x128xbf16>, vector<48x128xf32> -> vector<48x128xf32>
    %cst_18 = arith.constant 0.000000e+00 : f32
    %21 = vector.broadcast %cst_18 : f32 to vector<48x128xf32>
    %22 = arith.maximumf %20, %21 : vector<48x128xf32>
    %c0_19 = arith.constant 0 : index
    %c0_20 = arith.constant 0 : index
    %23 = vector.load %arg3[%c0_19, %c0_20] : memref<48x48xbf16, #tpu.memory_space<vmem>>, vector<48x48xbf16>
    %24 = arith.truncf %22 : vector<48x128xf32> to vector<48x128xbf16>
    %c0_21 = arith.constant 0 : index
    %c0_22 = arith.constant 0 : index
    %25 = vector.load %arg8[%c0_21, %c0_22] : memref<128x128xbf16, #tpu.memory_space<vmem>>, vector<128x128xbf16>
    %cst_23 = arith.constant dense<0.000000e+00> : vector<48x128xf32>
    %26 = tpu.matmul %24, %25, %cst_23 {dimension_numbers = #tpu.dot_dimension_numbers<[1], [0], [0], [1], [0, 0, 1, 1], [], []>} : vector<48x128xbf16>, vector<128x128xbf16>, vector<48x128xf32> -> vector<48x128xf32>
    %27 = arith.truncf %26 : vector<48x128xf32> to vector<48x128xbf16>
    %cst_24 = arith.constant dense<0.000000e+00> : vector<48x128xf32>
    %28 = tpu.matmul %23, %27, %cst_24 {dimension_numbers = #tpu.dot_dimension_numbers<[1], [0], [0], [1], [0, 0, 1, 1], [], []>} : vector<48x48xbf16>, vector<48x128xbf16>, vector<48x128xf32> -> vector<48x128xf32>
    %c0_25 = arith.constant 0 : index
    %c0_26 = arith.constant 0 : index
    %29 = vector.load %arg9[%c0_25, %c0_26] : memref<48x128xf32, #tpu.memory_space<vmem>>, vector<48x128xf32>
    tpu.vector_store %arg9[%c0_25, %c0_26], %28 {strides = array<i32>} : memref<48x128xf32, #tpu.memory_space<vmem>>, vector<48x128xf32>,
    return
  }
  func.func @transform_0(%arg0: i32) -> (i32, i32) {
    %c0_i32 = arith.constant 0 : i32
    %c0_i32_0 = arith.constant 0 : i32
    %c0_i32_1 = arith.constant 0 : i32
    return %c0_i32, %c0_i32_0 : i32, i32
  }
  func.func @transform_1(%arg0: i32) -> (i32, i32) {
    %c0_i32 = arith.constant 0 : i32
    %c0_i32_0 = arith.constant 0 : i32
    %c0_i32_1 = arith.constant 0 : i32
    return %c0_i32, %c0_i32_0 : i32, i32
  }
  func.func @transform_2(%arg0: i32) -> (i32, i32) {
    %c0_i32 = arith.constant 0 : i32
    %c0_i32_0 = arith.constant 0 : i32
    %c0_i32_1 = arith.constant 0 : i32
    return %c0_i32, %c0_i32_0 : i32, i32
  }
  func.func @transform_3(%arg0: i32) -> (i32, i32) {
    %c0_i32 = arith.constant 0 : i32
    %c0_i32_0 = arith.constant 0 : i32
    %c0_i32_1 = arith.constant 0 : i32
    return %c0_i32, %c0_i32_0 : i32, i32
  }
  func.func @transform_4(%arg0: i32) -> (i32, i32) {
    %c0_i32 = arith.constant 0 : i32
    %c0_i32_0 = arith.constant 0 : i32
    %c0_i32_1 = arith.constant 0 : i32
    return %c0_i32, %c0_i32_0 : i32, i32
  }
  func.func @transform_5(%arg0: i32) -> (i32, i32) {
    %c0_i32 = arith.constant 0 : i32
    %c0_i32_0 = arith.constant 0 : i32
    %c0_i32_1 = arith.constant 0 : i32
    return %c0_i32, %c0_i32_0 : i32, i32
  }
  func.func @transform_6(%arg0: i32) -> (i32, i32) {
    %c0_i32 = arith.constant 0 : i32
    %c0_i32_0 = arith.constant 0 : i32
    %c0_i32_1 = arith.constant 0 : i32
    return %c0_i32, %c0_i32_0 : i32, i32
  }
  func.func @transform_7(%arg0: i32) -> (i32, i32) {
    %c0_i32 = arith.constant 0 : i32
    %c0_i32_0 = arith.constant 0 : i32
    %c0_i32_1 = arith.constant 0 : i32
    return %c0_i32, %c0_i32_0 : i32, i32
  }
  func.func @transform_8(%arg0: i32) -> (i32, i32) {
    %c0_i32 = arith.constant 0 : i32
    %c0_i32_0 = arith.constant 0 : i32
    %c0_i32_1 = arith.constant 0 : i32
    return %c0_i32, %c0_i32_0 : i32, i32
  }
}

</mosaic_0001>

<bundles_post_ra>
// kernel: gripnet_forward.1
= control target key start
LH: loop header
LB: loop body
LE: loop exit
PB: predicated region body
PF: predicated region fallthrough
CT: control target
= control target key end

     0   :  { %vm175_vm0 = vcmask 261120   ;;  %v1134_v60 = vmov 0.0   ;;  %vm1135_vm1 = vmmov 0   ;;  %vm763_vm2 = vcmask 392192   ;;  %s1363_s4 = inlined_call_operand.vmem [shape: bf16[128,128], index: 4, kind: input, shape index: {}]   ;;  %s1364_s3 = inlined_call_operand.vmem [shape: bf16[32,128], index: 3, kind: input, shape index: {}]   ;;  %s1365_s0 = inlined_call_operand.vmem [shape: bf16[32,32], index: 0, kind: input, shape index: {}]   ;;  %s1366_s5 = inlined_call_operand.vmem [shape: bf16[128,128], index: 5, kind: input, shape index: {}]   ;;  %s1367_s6 = inlined_call_operand.vmem [shape: bf16[128,128], index: 6, kind: input, shape index: {}]   ;;  %s1368_s1 = inlined_call_operand.vmem [shape: bf16[48,32], index: 1, kind: input, shape index: {}]   ;;  %s1369_s7 = inlined_call_operand.vmem [shape: bf16[128,128], index: 7, kind: input, shape index: {}]   ;;  %s1370_s2 = inlined_call_operand.vmem [shape: bf16[48,48], index: 2, kind: input, shape index: {}]   ;;  %s1371_s8 = inlined_call_operand.vmem [shape: f32[48,128], index: 8, kind: output, shape index: {}]  }
   0x1   :  { %v1092_v0 = vld [vmem:[%s1363_s4 + $0x38] sm:$0xff]   ;;  %v1093_v1 = vld [vmem:[%s1363_s4 + $0x30] sm:$0xff]   ;;  %v1094_v2 = vld [vmem:[%s1363_s4 + $0x28] sm:$0xff]  }
   0x2   :  { %952 = vmatprep.subr.bf16.mxu0 %v1092_v0  ;;  %v1095_v3 = vld [vmem:[%s1363_s4 + $0x20] sm:$0xff]   ;;  %v1096_v5 = vld [vmem:[%s1363_s4 + $0x18] sm:$0xff]   ;;  %v1097_v6 = vld [vmem:[%s1363_s4 + $0x10] sm:$0xff]  }
   0x3   :  { %953 = vmatpush3.bf16.msra.mxu0 %v1092_v0  ;;  %v1100_v4 = vld [vmem:[%s1364_s3] sm:$0xff]   ;;  %v1098_v7 = vld [vmem:[%s1363_s4 + $0x8] sm:$0xff]   ;;  %v1104_v17 = vld [vmem:[%s1366_s5 + $0x38] sm:$0xff]  }
   0x4   :  { %954 = vmatprep.subr.bf16.mxu0 %v1093_v1  ;;  %968 = vmatprep.mubr.bf16.mxu0 %v1100_v4  ;;  %v1099_v8 = vld [vmem:[%s1363_s4] sm:$0xff]   ;;  %v1101_v9 = vld [vmem:[%s1364_s3 + $0x8] sm:$0xff]   ;;  %v1105_v19 = vld [vmem:[%s1366_s5 + $0x30] sm:$0xff]  }
   0x5   :  { %v1102_v10 = vld [vmem:[%s1365_s0] sm:$0xff]   ;;  %v1103_v18 = vld [vmem:[%s1365_s0 + $0x8] sm:$0xff]   ;;  %v1108_v22 = vld [vmem:[%s1366_s5 + $0x18] sm:$0xff]  }
   0x6   :  { %976 = vmatprep.mubr.msk.bf16.mxu1 %vm175_vm0, %v1102_v10  ;;  %v1106_v20 = vld [vmem:[%s1366_s5 + $0x28] sm:$0xff]   ;;  %v1107_v21 = vld [vmem:[%s1366_s5 + $0x20] sm:$0xff]   ;;  %v1109_v23 = vld [vmem:[%s1366_s5 + $0x10] sm:$0xff]  }
   0x7   :  { %955 = vmatpush3.bf16.msra.mxu0 %v1093_v1  ;;  %v1110_v24 = vld [vmem:[%s1366_s5 + $0x8] sm:$0xff]   ;;  %v1111_v25 = vld [vmem:[%s1366_s5] sm:$0xff]   ;;  %v1112_v42 = vld [vmem:[%s1367_s6 + $0x38] sm:$0xff]  }
   0x8   :  { %956 = vmatprep.subr.bf16.mxu0 %v1094_v2  ;;  %v1113_v43 = vld [vmem:[%s1367_s6 + $0x30] sm:$0xff]   ;;  %v1114_v44 = vld [vmem:[%s1367_s6 + $0x28] sm:$0xff]   ;;  %v1115_v45 = vld [vmem:[%s1367_s6 + $0x20] sm:$0xff]  }
   0x9   :  { %v1116_v46 = vld [vmem:[%s1367_s6 + $0x18] sm:$0xff]   ;;  %v1117_v47 = vld [vmem:[%s1367_s6 + $0x10] sm:$0xff]   ;;  %v1118_v48 = vld [vmem:[%s1367_s6 + $0x8] sm:$0xff]  }
   0xa   :  { %v1119_v49 = vld [vmem:[%s1367_s6] sm:$0xff]   ;;  %v1123_v4 = vld [vmem:[%s1369_s7 + $0x38] sm:$0xff]  }
   0xb   :  { %957 = vmatpush3.bf16.msra.mxu0 %v1094_v2 }
   0xc   :  { %958 = vmatprep.subr.bf16.mxu0 %v1095_v3 }
   0xf   :  { %959 = vmatpush3.bf16.msra.mxu0 %v1095_v3  ;;  %v1120_v3 = vld [vmem:[%s1368_s1] sm:$0xff]  }
  0x10   :  { %960 = vmatprep.subr.bf16.mxu0 %v1096_v5 }
  0x13   :  { %961 = vmatpush3.bf16.msra.mxu0 %v1096_v5  ;;  %v1124_v5 = vld [vmem:[%s1369_s7 + $0x30] sm:$0xff]  }
  0x14   :  { %962 = vmatprep.subr.bf16.mxu0 %v1097_v6 }
  0x17   :  { %963 = vmatpush3.bf16.msra.mxu0 %v1097_v6  ;;  %v1121_v6 = vld [vmem:[%s1368_s1 + $0x8] sm:$0xff]  }
  0x18   :  { %964 = vmatprep.subr.bf16.mxu0 %v1098_v7 }
  0x1b   :  { %965 = vmatpush3.bf16.msra.mxu0 %v1098_v7  ;;  %v1125_v7 = vld [vmem:[%s1369_s7 + $0x28] sm:$0xff]  }
  0x1c   :  { %966 = vmatprep.subr.bf16.mxu0 %v1099_v8 }
  0x1f   :  { %967 = vmatpush3.bf16.msra.mxu0 %v1099_v8  ;;  %v1126_v8 = vld [vmem:[%s1369_s7 + $0x20] sm:$0xff]  }
  0x22   :  { %969 = vmatmul.mubr.bf16.vlgmr.msra.gmra.mxu0 %v1101_v9  ;;  %v1122_v9 = vld [vmem:[%s1368_s1 + $0x10] sm:$0xff]  }
  0x23   :  { %1004 = vmatprep.mubr.msk.bf16.mxu0 %vm175_vm0, %v1102_v10  ;;  %v1127_v10 = vld [vmem:[%s1369_s7 + $0x18] sm:$0xff]  }
  0xe2   :  { %v970_v11 = vpop.f32.mrf.mxu0 }
  0xe4   :  { %v148_v12 = vpop.f32.mrf.mxu0 }
  0xe6   :  { %v971_v13 = vpop.f32.mrf.mxu0 }
  0xe7   :  { %v164_v14 = vpack.c.bf16 %v971_v13, %v970_v11  ;;  %v1128_v11 = vld [vmem:[%s1369_s7 + $0x10] sm:$0xff]   ;;  %v1130_v13 = vld [vmem:[%s1369_s7] sm:$0xff]  }
  0xe8   :  { %v151_v15 = vpop.f32.mrf.mxu0 }
  0xe9   :  { %v163_v16 = vpack.c.bf16 %v151_v15, %v148_v12  ;;  %972 = vmatprep.subr.bf16.mxu1 %v164_v14  ;;  %v1129_v12 = vld [vmem:[%s1369_s7 + $0x8] sm:$0xff]  }
  0xea   :  { %973 = vmatpush3.bf16.msra.mxu1 %v164_v14 }
  0xeb   :  { %974 = vmatprep.subr.bf16.mxu1 %v163_v16 }
  0xee   :  { %975 = vmatpush3.bf16.msra.mxu1 %v163_v16 }
  0xef   :  { %980 = vmatprep.subr.bf16.mxu1 %v1104_v17 }
  0xf1   :  { %977 = vmatmul.mubr.msk.bf16.vlgmr.msra.gmra.mxu1 %vm175_vm0, %v1103_v18 }
  0xf2   :  { %981 = vmatpush3.bf16.msra.mxu1 %v1104_v17 }
  0xf3   :  { %982 = vmatprep.subr.bf16.mxu1 %v1105_v19 }
  0xf6   :  { %983 = vmatpush3.bf16.msra.mxu1 %v1105_v19 }
  0xf7   :  { %984 = vmatprep.subr.bf16.mxu1 %v1106_v20 }
  0xfa   :  { %985 = vmatpush3.bf16.msra.mxu1 %v1106_v20 }
  0xfb   :  { %986 = vmatprep.subr.bf16.mxu1 %v1107_v21 }
  0xfe   :  { %987 = vmatpush3.bf16.msra.mxu1 %v1107_v21 }
  0xff   :  { %988 = vmatprep.subr.bf16.mxu1 %v1108_v22 }
 0x102   :  { %989 = vmatpush3.bf16.msra.mxu1 %v1108_v22 }
 0x103   :  { %990 = vmatprep.subr.bf16.mxu1 %v1109_v23 }
 0x106   :  { %991 = vmatpush3.bf16.msra.mxu1 %v1109_v23 }
 0x107   :  { %992 = vmatprep.subr.bf16.mxu1 %v1110_v24 }
 0x10a   :  { %993 = vmatpush3.bf16.msra.mxu1 %v1110_v24 }
 0x10b   :  { %994 = vmatprep.subr.bf16.mxu1 %v1111_v25 }
 0x10e   :  { %995 = vmatpush3.bf16.msra.mxu1 %v1111_v25 }
 0x10f   :  { %1028 = vmatprep.subr.bf16.mxu1 %v1134_v60 }
 0x1b1   :  { %v978_v26 = vpop.f32.mrf.mxu1 }
 0x1b2   :  { %v233_v33 = vmax.f32 %v978_v26, 0.0 }
 0x1b3   :  { %v216_v27 = vpop.f32.mrf.mxu1 }
 0x1b4   :  { %v231_v31 = vmax.f32 %v216_v27, 0.0 }
 0x1b5   :  { %v979_v28 = vpop.f32.mrf.mxu1 }
 0x1b6   :  { %v234_v29 = vmax.f32 %v979_v28, 0.0 }
 0x1b7   :  { %v219_v30 = vpop.f32.mrf.mxu1 }
 0x1b8   :  { %v232_v32 = vmax.f32 %v219_v30, 0.0  ;;  %v236_v35 = vpack.c.bf16 %v234_v29, %v233_v33 }
 0x1ba   :  { %v235_v34 = vpack.c.bf16 %v232_v32, %v231_v31 }
 0x1bc   :  { %996 = vmatprep.mubr.bf16.mxu1 %v235_v34 }
 0x1bd   :  { %997 = vmatmul.mubr.bf16.vlgmr.msra.gmra.mxu1 %v236_v35 }
 0x1be   :  { %1032 = vmatprep.mubr.msk.bf16.mxu1 %vm1135_vm1, %v1134_v60 }
 0x27d   :  { %v998_v36 = vpop.f32.mrf.mxu1 }
 0x27f   :  { %v335_v37 = vpop.f32.mrf.mxu1 }
 0x281   :  { %v999_v38 = vpop.f32.mrf.mxu1 }
 0x282   :  { %v351_v39 = vpack.c.bf16 %v999_v38, %v998_v36 }
 0x283   :  { %v338_v40 = vpop.f32.mrf.mxu1 }
 0x284   :  { %v350_v41 = vpack.c.bf16 %v338_v40, %v335_v37  ;;  %1000 = vmatprep.subr.bf16.mxu0 %v351_v39 }
 0x285   :  { %1001 = vmatpush3.bf16.msra.mxu0 %v351_v39 }
 0x286   :  { %1002 = vmatprep.subr.bf16.mxu0 %v350_v41 }
 0x289   :  { %1003 = vmatpush3.bf16.msra.mxu0 %v350_v41 }
 0x28a   :  { %1008 = vmatprep.subr.bf16.mxu0 %v1112_v42 }
 0x28c   :  { %1005 = vmatmul.mubr.msk.bf16.vlgmr.msra.gmra.mxu0 %vm175_vm0, %v1103_v18 }
 0x28d   :  { %1009 = vmatpush3.bf16.msra.mxu0 %v1112_v42 }
 0x28e   :  { %1010 = vmatprep.subr.bf16.mxu0 %v1113_v43 }
 0x291   :  { %1011 = vmatpush3.bf16.msra.mxu0 %v1113_v43 }
 0x292   :  { %1012 = vmatprep.subr.bf16.mxu0 %v1114_v44 }
 0x295   :  { %1013 = vmatpush3.bf16.msra.mxu0 %v1114_v44 }
 0x296   :  { %1014 = vmatprep.subr.bf16.mxu0 %v1115_v45 }
 0x299   :  { %1015 = vmatpush3.bf16.msra.mxu0 %v1115_v45 }
 0x29a   :  { %1016 = vmatprep.subr.bf16.mxu0 %v1116_v46 }
 0x29d   :  { %1017 = vmatpush3.bf16.msra.mxu0 %v1116_v46 }
 0x29e   :  { %1018 = vmatprep.subr.bf16.mxu0 %v1117_v47 }
 0x2a1   :  { %1019 = vmatpush3.bf16.msra.mxu0 %v1117_v47 }
 0x2a2   :  { %1020 = vmatprep.subr.bf16.mxu0 %v1118_v48 }
 0x2a5   :  { %1021 = vmatpush3.bf16.msra.mxu0 %v1118_v48 }
 0x2a6   :  { %1022 = vmatprep.subr.bf16.mxu0 %v1119_v49 }
 0x2a9   :  { %1023 = vmatpush3.bf16.msra.mxu0 %v1119_v49 }
 0x2aa   :  { %1072 = vmatprep.subr.bf16.mxu0 %v1134_v60 }
 0x34c   :  { %v1006_v50 = vpop.f32.mrf.mxu0 }
 0x34d   :  { %v403_v57 = vmax.f32 %v1006_v50, 0.0  ;;  %v1131_v50 = vld [vmem:[%s1370_s2] sm:$0xff]  }
 0x34e   :  { %v386_v51 = vpop.f32.mrf.mxu0 }
 0x34f   :  { %v401_v55 = vmax.f32 %v386_v51, 0.0  ;;  %v1132_v51 = vld [vmem:[%s1370_s2 + $0x8] sm:$0xff]  }
 0x350   :  { %v1007_v52 = vpop.f32.mrf.mxu0 }
 0x351   :  { %v404_v53 = vmax.f32 %v1007_v52, 0.0  ;;  %v1133_v52 = vld [vmem:[%s1370_s2 + $0x10] sm:$0xff]  }
 0x352   :  { %v389_v54 = vpop.f32.mrf.mxu0 }
 0x353   :  { %v402_v56 = vmax.f32 %v389_v54, 0.0  ;;  %v412_v59 = vpack.c.bf16 %v404_v53, %v403_v57 }
 0x355   :  { %v411_v58 = vpack.c.bf16 %v402_v56, %v401_v55 }
 0x357   :  { %1024 = vmatprep.mubr.bf16.mxu0 %v411_v58 }
 0x358   :  { %1025 = vmatmul.mubr.bf16.vlgmr.msra.gmra.mxu0 %v412_v59 }
 0x359   :  { %1078 = vmatprep.mubr.msk.bf16.mxu0 %vm1135_vm1, %v1134_v60 }
 0x418   :  { %v1026_v61 = vpop.f32.mrf.mxu0 }
 0x41a   :  { %v511_v62 = vpop.f32.mrf.mxu0 }
 0x41c   :  { %v1027_v63 = vpop.f32.mrf.mxu0 }
 0x41d   :  { %v527_v0 = vpack.c.bf16 %v1027_v63, %v1026_v61 }
 0x41e   :  { %v514_v1 = vpop.f32.mrf.mxu0 }
 0x41f   :  { %1029 = vmatpush3.bf16.msra.mxu1 %v527_v0  ;;  %v526_v2 = vpack.c.bf16 %v514_v1, %v511_v62 }
 0x420   :  { %1030 = vmatprep.subr.bf16.mxu1 %v1134_v60 }
 0x423   :  { %1031 = vmatpush3.bf16.msra.mxu1 %v526_v2 }
 0x424   :  { %1044 = vmatprep.subr.bf16.mxu1 %v1134_v60 }
 0x426   :  { %1033 = vmatmul.mubr.msk.bf16.vlgmr.msra.gmra.mxu1 %vm175_vm0, %v1120_v3 }
 0x427   :  { %1036 = vmatprep.mubr.msk.bf16.mxu1 %vm1135_vm1, %v1134_v60  ;;  %1045 = vmatpush3.bf16.msra.mxu1 %v1123_v4 }
 0x428   :  { %1046 = vmatprep.subr.bf16.mxu1 %v1134_v60 }
 0x42b   :  { %1047 = vmatpush3.bf16.msra.mxu1 %v1124_v5 }
 0x42c   :  { %1048 = vmatprep.subr.bf16.mxu1 %v1134_v60 }
 0x42e   :  { %1037 = vmatmul.mubr.msk.bf16.gmra.mxu1 %vm175_vm0, %v1121_v6 }
 0x42f   :  { %1040 = vmatprep.mubr.msk.bf16.mxu1 %vm1135_vm1, %v1134_v60  ;;  %1049 = vmatpush3.bf16.msra.mxu1 %v1125_v7 }
 0x430   :  { %1050 = vmatprep.subr.bf16.mxu1 %v1134_v60 }
 0x433   :  { %1051 = vmatpush3.bf16.msra.mxu1 %v1126_v8 }
 0x434   :  { %1052 = vmatprep.subr.bf16.mxu1 %v1134_v60 }
 0x436   :  { %1041 = vmatmul.mubr.msk.bf16.gmra.mxu1 %vm175_vm0, %v1122_v9 }
 0x437   :  { %1053 = vmatpush3.bf16.msra.mxu1 %v1127_v10  ;;  %1060 = vmatprep.mubr.msk.bf16.mxu1 %vm1135_vm1, %v1134_v60 }
 0x438   :  { %1054 = vmatprep.subr.bf16.mxu1 %v1134_v60 }
 0x43b   :  { %1055 = vmatpush3.bf16.msra.mxu1 %v1128_v11 }
 0x43c   :  { %1056 = vmatprep.subr.bf16.mxu1 %v1134_v60 }
 0x43f   :  { %1057 = vmatpush3.bf16.msra.mxu1 %v1129_v12 }
 0x440   :  { %1058 = vmatprep.subr.bf16.mxu1 %v1134_v60 }
 0x443   :  { %1059 = vmatpush3.bf16.msra.mxu1 %v1130_v13 }
 0x4e6   :  { %v586_v14 = vpop.f32.mrf.mxu1 }
 0x4e7   :  { %v609_v17 = vmax.f32 %v586_v14, 0.0 }
 0x4e8   :  { %v1034_v15 = vpop.f32.mrf.mxu1 }
 0x4ea   :  { %v589_v16 = vpop.f32.mrf.mxu1 }
 0x4eb   :  { %v610_v18 = vmax.f32 %v589_v16, 0.0 }
 0x4ec   :  { %v1035_v19 = vpop.f32.mrf.mxu1 }
 0x4ed   :  { %v621_v20 = vpack.c.bf16 %v610_v18, %v609_v17 }
 0x4ee   :  { %v594_v21 = vpop.f32.mrf.mxu1 }
 0x4ef   :  { %1061 = vmatmul.mubr.bf16.vlgmr.msra.gmra.mxu1 %v621_v20  ;;  %v611_v24 = vmax.f32 %v594_v21, 0.0 }
 0x4f0   :  { %v1038_v22 = vpop.f32.mrf.mxu1  ;;  %1064 = vmatprep.mubr.msk.bf16.mxu1 %vm1135_vm1, %v1134_v60 }
 0x4f2   :  { %v597_v23 = vpop.f32.mrf.mxu1 }
 0x4f3   :  { %v612_v25 = vmax.f32 %v597_v23, 0.0 }
 0x4f4   :  { %v1039_v26 = vpop.f32.mrf.mxu1 }
 0x4f5   :  { %v622_v27 = vpack.c.bf16 %v612_v25, %v611_v24 }
 0x4f6   :  { %v602_v28 = vpop.f32.mrf.mxu1 }
 0x4f7   :  { %1065 = vmatmul.mubr.bf16.gmra.mxu1 %v622_v27  ;;  %v613_v31 = vmax.f32 %v602_v28, 0.0 }
 0x4f8   :  { %v1042_v29 = vpop.f32.mrf.mxu1  ;;  %1068 = vmatprep.mubr.msk.bf16.mxu1 %vm1135_vm1, %v1134_v60 }
 0x4fa   :  { %v605_v30 = vpop.f32.mrf.mxu1 }
 0x4fb   :  { %v614_v32 = vmax.f32 %v605_v30, 0.0 }
 0x4fc   :  { %v1043_v33 = vpop.f32.mrf.mxu1 }
 0x4fd   :  { %v623_v34 = vpack.c.bf16 %v614_v32, %v613_v31 }
 0x4ff   :  { %1069 = vmatmul.mubr.bf16.gmra.mxu1 %v623_v34 }
 0x5af   :  { %v722_v35 = vpop.f32.mrf.mxu1 }
 0x5b1   :  { %v1062_v36 = vpop.f32.mrf.mxu1 }
 0x5b3   :  { %v725_v37 = vpop.f32.mrf.mxu1 }
 0x5b4   :  { %v745_v49 = vpack.c.bf16 %v725_v37, %v722_v35 }
 0x5b5   :  { %v1063_v38 = vpop.f32.mrf.mxu1 }
 0x5b7   :  { %v730_v39 = vpop.f32.mrf.mxu1 }
 0x5b9   :  { %v1066_v40 = vpop.f32.mrf.mxu1 }
 0x5bb   :  { %v733_v41 = vpop.f32.mrf.mxu1 }
 0x5bc   :  { %v746_v48 = vpack.c.bf16 %v733_v41, %v730_v39 }
 0x5bd   :  { %v1067_v42 = vpop.f32.mrf.mxu1 }
 0x5bf   :  { %v738_v43 = vpop.f32.mrf.mxu1 }
 0x5c1   :  { %v1070_v44 = vpop.f32.mrf.mxu1 }
 0x5c3   :  { %v741_v45 = vpop.f32.mrf.mxu1 }
 0x5c4   :  { %v747_v46 = vpack.c.bf16 %v741_v45, %v738_v43 }
 0x5c5   :  { %v1071_v47 = vpop.f32.mrf.mxu1 }
 0x5c6   :  { %1073 = vmatpush3.bf16.msra.mxu0 %v747_v46 }
 0x5c7   :  { %1074 = vmatprep.subr.bf16.mxu0 %v1134_v60 }
 0x5ca   :  { %1075 = vmatpush3.bf16.msra.mxu0 %v746_v48 }
 0x5cb   :  { %1076 = vmatprep.subr.bf16.mxu0 %v1134_v60 }
 0x5ce   :  { %1077 = vmatpush3.bf16.msra.mxu0 %v745_v49 }
 0x5d1   :  { %1079 = vmatmul.mubr.msk.bf16.vlgmr.msra.gmra.mxu0 %vm763_vm2, %v1131_v50 }
 0x5d2   :  { %1082 = vmatprep.mubr.msk.bf16.mxu0 %vm1135_vm1, %v1134_v60 }
 0x5d9   :  { %1083 = vmatmul.mubr.msk.bf16.gmra.mxu0 %vm763_vm2, %v1132_v51 }
 0x5da   :  { %1086 = vmatprep.mubr.msk.bf16.mxu0 %vm1135_vm1, %v1134_v60 }
 0x5e1   :  { %1087 = vmatmul.mubr.msk.bf16.gmra.mxu0 %vm763_vm2, %v1133_v52 }
 0x691   :  { %v807_v53 = vpop.f32.mrf.mxu0 }
 0x692   :  { %830 = vst [vmem:[%s1371_s8] sm:$0xff] %v807_v53 }
 0x693   :  { %v1080_v54 = vpop.f32.mrf.mxu0 }
 0x695   :  { %v810_v55 = vpop.f32.mrf.mxu0 }
 0x696   :  { %831 = vst [vmem:[%s1371_s8 + $0x8] sm:$0xff] %v810_v55 }
 0x697   :  { %v1081_v56 = vpop.f32.mrf.mxu0 }
 0x699   :  { %v815_v57 = vpop.f32.mrf.mxu0 }
 0x69a   :  { %832 = vst [vmem:[%s1371_s8 + $0x10] sm:$0xff] %v815_v57 }
 0x69b   :  { %v1084_v58 = vpop.f32.mrf.mxu0 }
 0x69d   :  { %v818_v59 = vpop.f32.mrf.mxu0 }
 0x69e   :  { %833 = vst [vmem:[%s1371_s8 + $0x18] sm:$0xff] %v818_v59 }
 0x69f   :  { %v1085_v60 = vpop.f32.mrf.mxu0 }
 0x6a1   :  { %v823_v61 = vpop.f32.mrf.mxu0 }
 0x6a2   :  { %834 = vst [vmem:[%s1371_s8 + $0x20] sm:$0xff] %v823_v61 }
 0x6a3   :  { %v1088_v62 = vpop.f32.mrf.mxu0 }
 0x6a5   :  { %v826_v63 = vpop.f32.mrf.mxu0 }
 0x6a6   :  { %835 = vst [vmem:[%s1371_s8 + $0x28] sm:$0xff] %v826_v63 }
 0x6a7   :  { %v1089_v0 = vpop.f32.mrf.mxu0 }

</bundles_post_ra>
